<compile_context>
chip_gen: v5e
topology: v5e:2x2
jax: 0.10.0
libtpu: 0.0.40
codegen_flags: <defaults>
</compile_context>

<pallas_src>
import jax
import jax.numpy as jnp
from jax.experimental import pallas as pl
from jax.experimental.pallas import tpu as pltpu


def _scale_kernel(x_ref, s_ref, o_ref):
    # x_ref : (Rtile, Ltile) tile of the flattened (B*C, H*W) input
    # s_ref : (Rtile, 1) per-row (== per (b, c)) scale, broadcast across lanes
    o_ref[...] = (x_ref[...] * s_ref[...]).astype(o_ref.dtype)


def _pick_tiles(N, L, itemsize):
    """Pick (Rtile, Ltile) aiming at ~2 MiB blocks; every dim is either a
    (8,128)-aligned tile or the full array extent (always legal)."""
    target_bytes = 2 * 1024 * 1024
    target_elems = max(1, target_bytes // itemsize)

    if N * L <= target_elems:
        return N, L  # whole array in one block

    # Lane tile: take the full spatial extent when it still leaves room for
    # >= 8 rows per block; otherwise cap at a large multiple of 128.
    max_lanes_for_8_rows = max(128, target_elems // 8)
    if L <= max_lanes_for_8_rows:
        Ltile = L
    else:
        Ltile = (max_lanes_for_8_rows // 128) * 128

    rows = max(1, target_elems // Ltile)
    if rows >= N or N <= 8:
        Rtile = N
    else:
        Rtile = max(8, (rows // 8) * 8)
    return Rtile, Ltile


def scale_forward(x, scale):
    """x: (B, C, H, W), scale: (C,) -> (B, C, H, W) = x * scale[None,:,None,None]"""
    B, C, H, W = x.shape
    N = B * C
    L = H * W

    # Lane-dense 2-D view: rows = (b, c) pairs, lanes = flattened spatial.
    x2 = x.reshape(N, L)
    # Per-row scale: row r = b*C + c  ->  scale[c]. Cast to x dtype so the
    # in-kernel multiply stays in the (possibly narrow) input precision.
    s2 = jnp.broadcast_to(scale.astype(x.dtype)[None, :], (B, C)).reshape(N, 1)

    itemsize = x2.dtype.itemsize
    Rtile, Ltile = _pick_tiles(N, L, itemsize)
    grid = (pl.cdiv(N, Rtile), pl.cdiv(L, Ltile))

    out2 = pl.pallas_call(
        _scale_kernel,
        out_shape=jax.ShapeDtypeStruct((N, L), x.dtype),
        grid=grid,
        in_specs=[
            pl.BlockSpec((Rtile, Ltile), lambda i, j: (i, j)),
            pl.BlockSpec((Rtile, 1), lambda i, j: (i, 0)),
        ],
        out_specs=pl.BlockSpec((Rtile, Ltile), lambda i, j: (i, j)),
        compiler_params=pltpu.CompilerParams(
            dimension_semantics=("parallel", "parallel")),
        cost_estimate=pl.CostEstimate(
            flops=N * L,
            transcendentals=0,
            bytes_accessed=2 * x2.size * itemsize + s2.size * s2.dtype.itemsize),
    )(x2, s2)

    return out2.reshape(B, C, H, W)


if __name__ == "__main__":
    B, C, H, W = 2, 4, 16, 16
    key = jax.random.PRNGKey(0)
    kx, ks = jax.random.split(key)

    x = jax.random.normal(kx, (B, C, H, W), dtype=jnp.float32)
    # Module init: scale = init_value * ones(dim); perturb deterministically
    # so per-channel broadcasting is actually exercised.
    init_value = 1.0
    scale = init_value * jnp.ones((C,), dtype=jnp.float32) + \
        0.1 * jax.random.normal(ks, (C,), dtype=jnp.float32)

    out = jax.block_until_ready(scale_forward(x, scale))

    ref = x * scale[None, :, None, None]
    assert out.shape == (B, C, H, W)
    assert jnp.allclose(out, ref, atol=1e-6, rtol=1e-6), "mismatch vs reference"
    print("KERNEL_OK")
</pallas_src>

<mosaic_0001>
module attributes {stable_mosaic.version = 11 : i64} {
  func.func @_scale_kernel(%arg0: i32, %arg1: i32, %arg2: memref<8x256xf32, #tpu.memory_space<vmem>>, %arg3: memref<8x1xf32, #tpu.memory_space<vmem>>, %arg4: memref<8x256xf32, #tpu.memory_space<vmem>>) attributes {dimension_semantics = [#tpu.dimension_semantics<parallel>, #tpu.dimension_semantics<parallel>], iteration_bounds = array<i64: 1, 1>, scalar_prefetch = 0 : i64, scratch_operands = 0 : i64, tpu.core_type = #tpu.core_type<tc>, window_params = [{transform_indices = @transform_0, window_bounds = array<i64: 8, 256>}, {transform_indices = @transform_1, window_bounds = array<i64: 8, 1>}, {transform_indices = @transform_2, window_bounds = array<i64: 8, 256>}]} {
    %c0 = arith.constant 0 : index
    %c0_0 = arith.constant 0 : index
    %0 = vector.load %arg2[%c0, %c0_0] : memref<8x256xf32, #tpu.memory_space<vmem>>, vector<8x256xf32>
    %c0_1 = arith.constant 0 : index
    %c0_2 = arith.constant 0 : index
    %1 = vector.load %arg3[%c0_1, %c0_2] : memref<8x1xf32, #tpu.memory_space<vmem>>, vector<8x1xf32>
    %2 = vector.broadcast %1 : vector<8x1xf32> to vector<8x256xf32>
    %3 = arith.mulf %0, %2 : vector<8x256xf32>
    %c0_3 = arith.constant 0 : index
    %c0_4 = arith.constant 0 : index
    %4 = vector.load %arg4[%c0_3, %c0_4] : memref<8x256xf32, #tpu.memory_space<vmem>>, vector<8x256xf32>
    tpu.vector_store %arg4[%c0_3, %c0_4], %3 {strides = array<i32>} : memref<8x256xf32, #tpu.memory_space<vmem>>, vector<8x256xf32>,
    return
  }
  func.func @transform_0(%arg0: i32, %arg1: i32) -> (i32, i32) {
    %c0_i32 = arith.constant 0 : i32
    return %arg0, %arg1 : i32, i32
  }
  func.func @transform_1(%arg0: i32, %arg1: i32) -> (i32, i32) {
    %c0_i32 = arith.constant 0 : i32
    %c0_i32_0 = arith.constant 0 : i32
    return %arg0, %c0_i32 : i32, i32
  }
  func.func @transform_2(%arg0: i32, %arg1: i32) -> (i32, i32) {
    %c0_i32 = arith.constant 0 : i32
    return %arg0, %arg1 : i32, i32
  }
}

</mosaic_0001>

<bundles_post_ra>
// kernel: tpu_custom_call.1
= control target key start
LH: loop header
LB: loop body
LE: loop exit
PB: predicated region body
PF: predicated region fallthrough
CT: control target
= control target key end

     0   :  { %7 = vsyncpa [#allocation3], 0  ;;  %s138_s0 = inlined_call_operand.hbm [shape: f32[8,256], index: 0, kind: input, shape index: {}]   ;;  %s139_s1 = inlined_call_operand.vmem [shape: f32[8,1], index: 1, kind: input, shape index: {}]   ;;  %s140_s2 = inlined_call_operand.hbm [shape: f32[8,256], index: 2, kind: output, shape index: {}]  }
   0x1   :  { %8 = vsyncpa [#allocation4], 0  ;;  %s14_s11 = sshll.u32 %s138_s0, 4  ;;  %s111_s12 = smov [#allocation2]   ;;  %s15_s11 = int_to_ptr.hbm [resolvable:$true] %s14_s11 }
   0x2   :  { %s16_s13 = sshll.u32 %s111_s12, 4  ;;  %s17_s13 = int_to_ptr.vmem [resolvable:$true] %s16_s13 }
   0x3   :  { %19 = dma.hbm_to_vmem [thread:$0]  %s15_s11, 256, %s17_s13, [#allocation3]  }
   0x4   :  { %107 = dma.done.wait [#allocation3], 256  }
   0x5   :  { %108 = vsyncadd [#allocation3], 4294967040  ;;  %v112_v0 = vmov 0   ;;  %v28_v1 = vld [vmem:[%s139_s1] sm:$0xff]  ;;  %v27_v3 = vld [vmem:[#allocation2 + $0x8] sm:$0xff]  ;;  %s113_s16 = smov [#allocation5]  }
   0x6   :  { %58 = vset.pattern.permute.xlu0 %v112_v0  ;;  %v26_v2 = vld [vmem:[#allocation2] sm:$0xff]  ;;  %s43_s17 = sshll.u32 %s113_s16, 4  ;;  %s45_s19 = sshll.u32 %s140_s2, 4  ;;  %s44_s17 = int_to_ptr.vmem [resolvable:$true] %s43_s17  ;;  %s46_s19 = int_to_ptr.hbm [resolvable:$true] %s45_s19 }
   0x7   :  { %31 = vperm.xlu0 %58, %v28_v1  }
  0x79   :  { %v32_v4 = vpop.permute.xlu0 %31 }
  0x7a   :  { %v34_v5 = vmul.f32 %v32_v4, %v26_v2  ;;  %v35_v6 = vmul.f32 %v32_v4, %v27_v3 }
  0x7c   :  { %36 = vst [vmem:[#allocation5] sm:$0xff] %v34_v5 }
  0x7d   :  { %37 = vst [vmem:[#allocation5 + $0x8] sm:$0xff] %v35_v6 }
  0x7e   :  { %48 = dma.vmem_to_hbm [thread:$0]  %s44_s17, 256, %s46_s19, [#allocation4]  }
  0x7f   :  { %109 = dma.done.wait [#allocation4], 256  }
  0x80   :  { %110 = vsyncadd [#allocation4], 4294967040 }
  0x81   :  { %53 = vsyncpa [#allocation3], 1 }
  0x82   :  { %54 = vsyncpa [#allocation4], 1 }

</bundles_post_ra>
